<compile_context>
chip_gen: v5e
topology: v5e:2x2
jax: 0.10.0
libtpu: 0.0.40
codegen_flags: <defaults>
</compile_context>

<pallas_src>
import jax
import jax.numpy as jnp
from jax import lax
from jax.experimental import pallas as pl
from jax.experimental.pallas import tpu as pltpu


def _round_up(x, m):
    return ((x + m - 1) // m) * m


# --------------------------------------------------------------------------
# Kernels
# --------------------------------------------------------------------------
def head_kernel_single_k(x_ref, w_ref, b_ref, o_ref):
    """Whole reduction (E) fits in one tile: fused matmul + bias, no scratch.

    x_ref: (tm, Ep)  activations
    w_ref: (tn, Ep)  weight tile, native PyTorch (C, E) layout
    b_ref: (1,  tn)  bias tile
    o_ref: (tm, tn)  output tile (lane-dense)
    """
    acc = lax.dot_general(
        x_ref[...], w_ref[...],
        dimension_numbers=(((1,), (1,)), ((), ())),
        preferred_element_type=jnp.float32)
    o_ref[...] = (acc + b_ref[...]).astype(o_ref.dtype)


def head_kernel_multi_k(x_ref, w_ref, b_ref, o_ref, acc_ref):
    """Shape-generic reduction over K tiles with a resident f32 accumulator.

    x_ref:   (tm, tk)   activation tile
    w_ref:   (tn, tk)   weight tile, native PyTorch (C, E) layout
    b_ref:   (1,  tn)   bias tile
    o_ref:   (tm, tn)   output tile (lane-dense)
    acc_ref: (tm, tn)   f32 accumulator, resident across the K axis
    """
    k = pl.program_id(2)

    @pl.when(k == 0)
    def _():
        acc_ref[...] = jnp.zeros_like(acc_ref)

    # Contract on E (axis 1 of both operands): (tm, tk) x (tn, tk) -> (tm, tn).
    acc_ref[...] += lax.dot_general(
        x_ref[...], w_ref[...],
        dimension_numbers=(((1,), (1,)), ((), ())),
        preferred_element_type=jnp.float32)

    @pl.when(k == pl.num_programs(2) - 1)
    def _():
        o_ref[...] = (acc_ref[...] + b_ref[...]).astype(o_ref.dtype)


# --------------------------------------------------------------------------
# Wrapper
# --------------------------------------------------------------------------
def _pick_k_tile(E):
    padded = _round_up(E, 128)
    for t in (512, 256, 128):
        if padded % t == 0:
            return t
    return 128


@jax.jit
def head_forward(feat, weight, bias):
    """feat: (B, E), weight: (C, E) PyTorch layout, bias: (C,) -> (B, C)."""
    B, E = feat.shape
    C, E2 = weight.shape
    assert E == E2 and bias.shape == (C,)

    # ---- tile selection (re-derived per shape, portable across v5e/v6e/v7x) --
    tm = min(256, _round_up(B, 8))                            # sublane-aligned M
    tn = 256 if (_round_up(C, 128) % 256 == 0) else 128       # lane-dense N
    tk = _pick_k_tile(E)                                      # 128-aligned K

    Bp, Cp, Ep = _round_up(B, tm), _round_up(C, tn), _round_up(E, tk)
    k_steps = Ep // tk

    # Zero-pad up to tile multiples (no-op when already aligned; exact math).
    x_p = jnp.pad(feat, ((0, Bp - B), (0, Ep - E)))
    w_p = jnp.pad(weight, ((0, Cp - C), (0, Ep - E)))
    b_p = jnp.pad(bias, (0, Cp - C)).reshape(1, Cp)

    cost = pl.CostEstimate(
        flops=2 * Bp * Ep * Cp,
        transcendentals=0,
        bytes_accessed=4 * (Bp * Ep + Cp * Ep + Cp + Bp * Cp),
    )

    if k_steps == 1:
        # ---------------- single-K fast path: 2-D grid, no scratch ----------
        grid = (Bp // tm, Cp // tn)
        out = pl.pallas_call(
            head_kernel_single_k,
            out_shape=jax.ShapeDtypeStruct((Bp, Cp), feat.dtype),
            grid_spec=pltpu.PrefetchScalarGridSpec(
                num_scalar_prefetch=0,
                grid=grid,
                in_specs=[
                    pl.BlockSpec((tm, Ep), lambda i, j: (i, 0)),   # activations
                    pl.BlockSpec((tn, Ep), lambda i, j: (j, 0)),   # weight (C,E)
                    pl.BlockSpec((1, tn), lambda i, j: (0, j)),    # bias
                ],
                out_specs=pl.BlockSpec((tm, tn), lambda i, j: (i, j)),
            ),
            compiler_params=pltpu.CompilerParams(
                dimension_semantics=("parallel", "parallel"),
                vmem_limit_bytes=32 * 1024 * 1024,
            ),
            cost_estimate=cost,
        )(x_p, w_p, b_p)
    else:
        # ---------------- general path: 3-D grid, resident accumulator ------
        grid = (Bp // tm, Cp // tn, k_steps)
        out = pl.pallas_call(
            head_kernel_multi_k,
            out_shape=jax.ShapeDtypeStruct((Bp, Cp), feat.dtype),
            grid_spec=pltpu.PrefetchScalarGridSpec(
                num_scalar_prefetch=0,
                grid=grid,
                in_specs=[
                    pl.BlockSpec((tm, tk), lambda i, j, k: (i, k)),  # activations
                    pl.BlockSpec((tn, tk), lambda i, j, k: (j, k)),  # weight (C,E)
                    pl.BlockSpec((1, tn), lambda i, j, k: (0, j)),   # bias
                ],
                out_specs=pl.BlockSpec((tm, tn), lambda i, j, k: (i, j)),
                scratch_shapes=[pltpu.VMEM((tm, tn), jnp.float32)],
            ),
            compiler_params=pltpu.CompilerParams(
                # M / N shard across TensorCores (v7x megacore); K (reduction) last.
                dimension_semantics=("parallel", "parallel", "arbitrary"),
                vmem_limit_bytes=32 * 1024 * 1024,
            ),
            cost_estimate=cost,
        )(x_p, w_p, b_p)

    return out[:B, :C]


if __name__ == "__main__":
    # Small shapes consistent with the module: batch=8, embedding=32, classes=16
    B, E, C = 8, 32, 16
    key = jax.random.PRNGKey(0)
    k_feat, k_w, k_b = jax.random.split(key, 3)

    feat = jax.random.normal(k_feat, (B, E), dtype=jnp.float32)
    # nn.Linear-style uniform init with bound 1/sqrt(E)
    bound = 1.0 / (E ** 0.5)
    weight = jax.random.uniform(k_w, (C, E), minval=-bound, maxval=bound,
                                dtype=jnp.float32)
    bias = jax.random.uniform(k_b, (C,), minval=-bound, maxval=bound,
                              dtype=jnp.float32)

    out = head_forward(feat, weight, bias)
    out = jax.block_until_ready(out)

    # Reference check against plain JAX (same math as PyTorch F.linear)
    ref = feat @ weight.T + bias
    assert out.shape == (B, C)
    assert jnp.allclose(out, ref, atol=1e-5, rtol=1e-5)

    print("KERNEL_OK")
</pallas_src>

<mosaic_0001>
module attributes {stable_mosaic.version = 11 : i64} {
  func.func @head_kernel_single_k(%arg0: i32, %arg1: i32, %arg2: memref<8x128xf32, #tpu.memory_space<vmem>>, %arg3: memref<128x128xf32, #tpu.memory_space<vmem>>, %arg4: memref<1x128xf32, #tpu.memory_space<vmem>>, %arg5: memref<8x128xf32, #tpu.memory_space<vmem>>) attributes {dimension_semantics = [#tpu.dimension_semantics<parallel>, #tpu.dimension_semantics<parallel>], iteration_bounds = array<i64: 1, 1>, scalar_prefetch = 0 : i64, scratch_operands = 0 : i64, tpu.core_type = #tpu.core_type<tc>, window_params = [{transform_indices = @transform_0, window_bounds = array<i64: 8, 128>}, {transform_indices = @transform_1, window_bounds = array<i64: 128, 128>}, {transform_indices = @transform_2, window_bounds = array<i64: 1, 128>}, {transform_indices = @transform_3, window_bounds = array<i64: 8, 128>}]} {
    %c0 = arith.constant 0 : index
    %c0_0 = arith.constant 0 : index
    %0 = vector.load %arg2[%c0, %c0_0] : memref<8x128xf32, #tpu.memory_space<vmem>>, vector<8x128xf32>
    %c0_1 = arith.constant 0 : index
    %c0_2 = arith.constant 0 : index
    %1 = vector.load %arg3[%c0_1, %c0_2] : memref<128x128xf32, #tpu.memory_space<vmem>>, vector<128x128xf32>
    %cst = arith.constant dense<0.000000e+00> : vector<8x128xf32>
    %2 = tpu.matmul %0, %1, %cst {dimension_numbers = #tpu.dot_dimension_numbers<[1], [1], [0], [0], [0, 0, 1, 0], [], []>} : vector<8x128xf32>, vector<128x128xf32>, vector<8x128xf32> -> vector<8x128xf32>
    %c0_3 = arith.constant 0 : index
    %c0_4 = arith.constant 0 : index
    %3 = vector.load %arg4[%c0_3, %c0_4] : memref<1x128xf32, #tpu.memory_space<vmem>>, vector<1x128xf32>
    %4 = vector.broadcast %3 : vector<1x128xf32> to vector<8x128xf32>
    %5 = arith.addf %2, %4 : vector<8x128xf32>
    %c0_5 = arith.constant 0 : index
    %c0_6 = arith.constant 0 : index
    %6 = vector.load %arg5[%c0_5, %c0_6] : memref<8x128xf32, #tpu.memory_space<vmem>>, vector<8x128xf32>
    tpu.vector_store %arg5[%c0_5, %c0_6], %5 {strides = array<i32>} : memref<8x128xf32, #tpu.memory_space<vmem>>, vector<8x128xf32>,
    return
  }
  func.func @transform_0(%arg0: i32, %arg1: i32) -> (i32, i32) {
    %c0_i32 = arith.constant 0 : i32
    %c0_i32_0 = arith.constant 0 : i32
    return %arg0, %c0_i32 : i32, i32
  }
  func.func @transform_1(%arg0: i32, %arg1: i32) -> (i32, i32) {
    %c0_i32 = arith.constant 0 : i32
    %c0_i32_0 = arith.constant 0 : i32
    return %arg1, %c0_i32 : i32, i32
  }
  func.func @transform_2(%arg0: i32, %arg1: i32) -> (i32, i32) {
    %c0_i32 = arith.constant 0 : i32
    %c0_i32_0 = arith.constant 0 : i32
    return %c0_i32, %arg1 : i32, i32
  }
  func.func @transform_3(%arg0: i32, %arg1: i32) -> (i32, i32) {
    %c0_i32 = arith.constant 0 : i32
    return %arg0, %arg1 : i32, i32
  }
}

</mosaic_0001>

<bundles_post_ra>
// kernel: head_forward.1
= control target key start
LH: loop header
LB: loop body
LE: loop exit
PB: predicated region body
PF: predicated region fallthrough
CT: control target
= control target key end

     0   :  { %s179_s0 = inlined_call_operand.vmem [shape: f32[8,128], index: 0, kind: input, shape index: {}]   ;;  %s180_s1 = inlined_call_operand.vmem [shape: f32[128,128], index: 1, kind: input, shape index: {}]   ;;  %s181_s2 = inlined_call_operand.vmem [shape: f32[1,128], index: 2, kind: input, shape index: {}]   ;;  %s182_s3 = inlined_call_operand.hbm [shape: f32[8,128], index: 3, kind: output, shape index: {}]  }
   0x1   :  { %v31_v0 = vld [vmem:[%s180_s1 + $0x78] sm:$0xff]  ;;  %v30_v1 = vld [vmem:[%s180_s1 + $0x70] sm:$0xff] }
   0x2   :  { %36 = vmatpush.xpose.msra.mxu0 %v31_v0 }
   0x3   :  { %8 = vsyncpa [#allocation3], 0  ;;  %v29_v2 = vld [vmem:[%s180_s1 + $0x68] sm:$0xff]  ;;  %v28_v3 = vld [vmem:[%s180_s1 + $0x60] sm:$0xff]  ;;  %s101_s21 = smov [#allocation2]   ;;  %s64_s25 = sshll.u32 %s182_s3, 4  ;;  %s65_s25 = int_to_ptr.hbm [resolvable:$true] %s64_s25 }
   0x4   :  { %v27_v4 = vld [vmem:[%s180_s1 + $0x58] sm:$0xff]  ;;  %v26_v5 = vld [vmem:[%s180_s1 + $0x50] sm:$0xff]  ;;  %v25_v6 = vld [vmem:[%s180_s1 + $0x48] sm:$0xff]  ;;  %s62_s22 = sshll.u32 %s101_s21, 4  ;;  %s63_s22 = int_to_ptr.vmem [resolvable:$true] %s62_s22 }
   0x5   :  { %v24_v7 = vld [vmem:[%s180_s1 + $0x40] sm:$0xff]  ;;  %v23_v8 = vld [vmem:[%s180_s1 + $0x38] sm:$0xff]  ;;  %v22_v9 = vld [vmem:[%s180_s1 + $0x30] sm:$0xff] }
   0x6   :  { %37 = vmatpush.xpose.msra.mxu0 %v30_v1  ;;  %v21_v10 = vld [vmem:[%s180_s1 + $0x28] sm:$0xff]  ;;  %v20_v11 = vld [vmem:[%s180_s1 + $0x20] sm:$0xff]  ;;  %v19_v12 = vld [vmem:[%s180_s1 + $0x18] sm:$0xff] }
   0x7   :  { %v18_v13 = vld [vmem:[%s180_s1 + $0x10] sm:$0xff]  ;;  %v17_v14 = vld [vmem:[%s180_s1 + $0x8] sm:$0xff]  ;;  %v16_v15 = vld [vmem:[%s180_s1] sm:$0xff] }
   0x8   :  { %v15_v16 = vld [vmem:[%s179_s0] sm:$0xff] }
   0x9   :  { %v74_v17 = vld [vmem:[%s181_s2] ss:$0 sm:$0xff] }
   0xa   :  { %38 = vmatpush.xpose.msra.mxu0 %v29_v2 }
   0xe   :  { %39 = vmatpush.xpose.msra.mxu0 %v28_v3 }
  0x12   :  { %40 = vmatpush.xpose.msra.mxu0 %v27_v4 }
  0x16   :  { %41 = vmatpush.xpose.msra.mxu0 %v26_v5 }
  0x1a   :  { %42 = vmatpush.xpose.msra.mxu0 %v25_v6 }
  0x1e   :  { %43 = vmatpush.xpose.msra.mxu0 %v24_v7 }
  0x22   :  { %44 = vmatpush.xpose.msra.mxu0 %v23_v8 }
  0x26   :  { %45 = vmatpush.xpose.msra.mxu0 %v22_v9 }
  0x2a   :  { %46 = vmatpush.xpose.msra.mxu0 %v21_v10 }
  0x2e   :  { %47 = vmatpush.xpose.msra.mxu0 %v20_v11 }
  0x32   :  { %48 = vmatpush.xpose.msra.mxu0 %v19_v12 }
  0x36   :  { %49 = vmatpush.xpose.msra.mxu0 %v18_v13 }
  0x3a   :  { %50 = vmatpush.xpose.msra.mxu0 %v17_v14 }
  0x3e   :  { %51 = vmatpush.xpose.msra.mxu0 %v16_v15 }
  0x41   :  { %52 = vmatmul.f32.vlgmr.msra.gmra.mxu0 %v15_v16 }
  0xbe   :  { %v53_v18 = vpop.f32.mrf.mxu0 }
  0xbf   :  { %v54_v19 = vadd.f32 %v74_v17, %v53_v18 }
  0xc1   :  { %56 = vst [vmem:[#allocation2] sm:$0xff] %v54_v19 }
  0xc2   :  { %67 = dma.vmem_to_hbm [thread:$0]  %s63_s22, 128, %s65_s25, [#allocation3]  }
  0xc3   :  { %99 = dma.done.wait [#allocation3], 128  }
  0xc4   :  { %100 = vsyncadd [#allocation3], 4294967168 }
  0xc5   :  { %72 = vsyncpa [#allocation3], 1 }

</bundles_post_ra>
